<compile_context>
chip_gen: v7x
topology: tpu7x:2x2x1
jax: 0.10.0
libtpu: 0.0.40
codegen_flags: <defaults>
</compile_context>

<pallas_src>
import functools

import jax
import jax.numpy as jnp
from jax import lax
from jax.experimental import pallas as pl
from jax.experimental.pallas import tpu as pltpu

_BIG = 1e30


def _round_up(x, m):
    return ((x + m - 1) // m) * m


def _choose_tiles(n, d, c, has_scores):
    """Pick (block_m, block_n, vmem_limit_bytes) from the chip's VMEM budget."""
    try:
        info = pltpu.get_tpu_info()
        vmem_cap = int(getattr(info, "vmem_capacity_bytes", 64 * 1024 * 1024))
    except Exception:
        vmem_cap = 64 * 1024 * 1024      # conservative: v7x has 64 MiB per TC
    budget = int(vmem_cap * 0.75)

    block_n = min(512, _round_up(n, 128))          # lane-dense, multiple of 128

    def est(tm):
        temps = 4 * tm * block_n * 4                                   # (TM,TN) f32 temps
        col_bufs = 2 * (d * block_n * 2 + block_n * 4 + block_n * 4)   # gallery/sq/labels
        row_bufs = 2 * (tm * d * 2 + tm * 4 + (tm * c * 4 if has_scores else 0))
        return temps + col_bufs + row_bufs + 2 * tm * 4 + (1 << 20)

    block_m = 16
    for cand in (256, 128, 64, 32, 16):
        if cand <= max(16, _round_up(n, 16)) and est(cand) <= budget:
            block_m = cand
            break
    block_m = max(16, min(block_m, _round_up(n, 16)))

    vmem_limit = int(min(vmem_cap - (4 << 20), 112 * 1024 * 1024))
    return block_m, block_n, vmem_limit


# --------------------------------------------------------------------------
# Per-block computations.
# --------------------------------------------------------------------------
def _rank_block(i, j, block_m, block_n, fq_ref, gt_ref, sqh_ref,
                lrow_ref, lcol_ref, ms_ref, md_ref):
    """Update running row-wise mins for one (row block, column block) pair."""
    # Canonical (TM,D) x (D,TN) MXU contraction (gallery pre-transposed in HBM).
    g = lax.dot_general(
        fq_ref[...], gt_ref[...],
        dimension_numbers=(((1,), (0,)), ((), ())),
        preferred_element_type=jnp.float32)                 # (TM, TN) f32

    # 0.5*d(i,j)^2 - 0.5*||f_i||^2 == 0.5*||f_j||^2 - <f_i,f_j>.  Row-wise min
    # comparisons are invariant to the dropped per-row constant and the 0.5
    # scale, so a single wide subtract suffices.  Padded gallery columns carry
    # sq = +BIG from the wrapper, so no column-validity mask is needed here.
    dist = sqh_ref[...] - g                                 # (TM, TN)

    same = lcol_ref[...] == lrow_ref[...]                   # (TM, TN) same identity
    row_g = i * block_m + lax.broadcasted_iota(jnp.int32, (block_m, 1), 0)
    col_g = j * block_n + lax.broadcasted_iota(jnp.int32, (1, block_n), 1)
    not_self = row_g != col_g                               # (TM, TN) exclude diagonal

    big = jnp.float32(_BIG)
    ms = jnp.min(jnp.where(same & not_self, dist, big), axis=1, keepdims=True)
    md = jnp.min(jnp.where(same, big, dist), axis=1, keepdims=True)
    ms_ref[...] = jnp.minimum(ms_ref[...], ms)
    md_ref[...] = jnp.minimum(md_ref[...], md)


def _rank_count(i, block_m, n_rows, ms_ref, md_ref):
    """Rank-1 'correct' count for one finished row block.  (1,1) float32."""
    row_g = i * block_m + lax.broadcasted_iota(jnp.int32, (block_m, 1), 0)
    valid = row_g < n_rows                  # mask zero-padded query rows
    correct = jnp.where(valid & (ms_ref[...] < md_ref[...]), 1.0, 0.0)
    return jnp.sum(correct).reshape(1, 1)


def _cls_partial(i, block_m, n_rows, scores_ref, lcol_ref):
    """Top-1 'correct' count for one row block.  (1,1) float32."""
    s = scores_ref[...]                     # (TM, C) f32
    lab_col = lcol_ref[...]                 # (TM, 1) int32
    c = s.shape[1]
    col = lax.broadcasted_iota(jnp.int32, s.shape, 1)
    maxv = jnp.max(s, axis=1, keepdims=True)
    # First maximal index == torch.argmax tie-breaking.  (All-NaN rows give
    # pred == C and are counted wrong; edge case only.)
    pred = jnp.min(jnp.where(s >= maxv, col, jnp.int32(c)), axis=1, keepdims=True)
    row_g = i * block_m + lax.broadcasted_iota(jnp.int32, (block_m, 1), 0)
    valid = row_g < n_rows
    correct = jnp.where(valid & (pred == lab_col), 1.0, 0.0)
    return jnp.sum(correct).reshape(1, 1)


# --------------------------------------------------------------------------
# Kernels: rank-only and fused (rank + cls).  Accumulator pattern (P3).
# --------------------------------------------------------------------------
def _rank_kernel(fq_ref, gt_ref, sqh_ref, lrow_ref, lcol_ref,
                 rank_ref, ms_ref, md_ref, *, block_m, block_n, n_rows):
    i = pl.program_id(0)
    j = pl.program_id(1)
    last_i = pl.num_programs(0) - 1
    last_j = pl.num_programs(1) - 1

    @pl.when((i == 0) & (j == 0))
    def _init():
        rank_ref[...] = jnp.zeros_like(rank_ref)

    @pl.when(j == 0)
    def _new_row_block():
        ms_ref[...] = jnp.full(ms_ref.shape, _BIG, dtype=jnp.float32)
        md_ref[...] = jnp.full(md_ref.shape, _BIG, dtype=jnp.float32)

    _rank_block(i, j, block_m, block_n, fq_ref, gt_ref, sqh_ref,
                lrow_ref, lcol_ref, ms_ref, md_ref)

    @pl.when(j == last_j)
    def _row_block_done():
        rank_ref[...] += _rank_count(i, block_m, n_rows, ms_ref, md_ref)

    @pl.when((i == last_i) & (j == last_j))
    def _finalize():
        rank_ref[...] = rank_ref[...] * jnp.float32(1.0 / n_rows)


def _fused_kernel(fq_ref, gt_ref, sqh_ref, lrow_ref, lcol_ref, scores_ref,
                  rank_ref, cls_ref, ms_ref, md_ref, *, block_m, block_n, n_rows):
    i = pl.program_id(0)
    j = pl.program_id(1)
    last_i = pl.num_programs(0) - 1
    last_j = pl.num_programs(1) - 1

    @pl.when((i == 0) & (j == 0))
    def _init():
        rank_ref[...] = jnp.zeros_like(rank_ref)
        cls_ref[...] = jnp.zeros_like(cls_ref)

    @pl.when(j == 0)
    def _new_row_block():
        ms_ref[...] = jnp.full(ms_ref.shape, _BIG, dtype=jnp.float32)
        md_ref[...] = jnp.full(md_ref.shape, _BIG, dtype=jnp.float32)
        cls_ref[...] += _cls_partial(i, block_m, n_rows, scores_ref, lcol_ref)

    _rank_block(i, j, block_m, block_n, fq_ref, gt_ref, sqh_ref,
                lrow_ref, lcol_ref, ms_ref, md_ref)

    @pl.when(j == last_j)
    def _row_block_done():
        rank_ref[...] += _rank_count(i, block_m, n_rows, ms_ref, md_ref)

    @pl.when((i == last_i) & (j == last_j))
    def _finalize():
        inv_n = jnp.float32(1.0 / n_rows)
        rank_ref[...] = rank_ref[...] * inv_n
        cls_ref[...] = cls_ref[...] * inv_n


# --------------------------------------------------------------------------
# Wrapper: pads in HBM, builds specs, tiles rows x gallery columns.
# --------------------------------------------------------------------------
def reid_metrics_pallas(feats, labels, scores=None):
    n, d = feats.shape
    labels_i32 = labels.astype(jnp.int32).reshape(n)
    has_scores = scores is not None
    c = scores.shape[1] if has_scores else 0

    block_m, block_n, vmem_limit = _choose_tiles(n, d, c, has_scores)
    n_row_pad = _round_up(n, block_m)
    n_col_pad = _round_up(n, block_n)
    nrb = n_row_pad // block_m
    ncb = n_col_pad // block_n

    feats_f32 = feats.astype(jnp.float32)
    # Query row blocks: zero-padded to a multiple of TM, bf16 for the MXU.
    fq = jnp.pad(feats_f32, ((0, n_row_pad - n), (0, 0))).astype(jnp.bfloat16)
    # Gallery pre-transposed once in HBM to (D, Npad) bf16 (canonical MXU push).
    gt = jnp.transpose(
        jnp.pad(feats_f32, ((0, n_col_pad - n), (0, 0)))).astype(jnp.bfloat16)
    # 0.5*||f_j||^2 precomputed in the wrapper; padded columns get +BIG so they
    # never win a row-wise min (no in-kernel column masking).
    sqh = 0.5 * jnp.sum(feats_f32 * feats_f32, axis=1)
    sqh = jnp.pad(sqh, (0, n_col_pad - n), constant_values=_BIG)
    sqh = sqh.reshape(1, n_col_pad).astype(jnp.float32)
    lab_row = jnp.pad(labels_i32, (0, n_col_pad - n),
                      constant_values=-1).reshape(1, n_col_pad)
    lab_col = jnp.pad(labels_i32, (0, n_row_pad - n),
                      constant_values=-1).reshape(n_row_pad, 1)
    if has_scores:
        scores_p = jnp.pad(scores.astype(jnp.float32), ((0, n_row_pad - n), (0, 0)))

    grid = (nrb, ncb)
    cparams = pltpu.CompilerParams(
        # TODO(synk): v7x dual-TC -> "parallel" row axis + per-block partial
        # counts reduced outside the kernel.
        dimension_semantics=("arbitrary", "arbitrary"),
        vmem_limit_bytes=vmem_limit,
    )
    scratch = [pltpu.VMEM((block_m, 1), jnp.float32),    # running min_same
               pltpu.VMEM((block_m, 1), jnp.float32)]    # running min_diff

    def _call(use_buffered):
        # Single-buffer blocks whose index never changes across the grid
        # (double-buffering the resident gallery costs 2*N*D bf16 for nothing).
        col_kw = dict(pipeline_mode=pl.Buffered(1)) if (use_buffered and ncb == 1) else {}
        row_kw = dict(pipeline_mode=pl.Buffered(1)) if (use_buffered and nrb == 1) else {}

        fq_spec = pl.BlockSpec((block_m, d), lambda i, j: (i, 0), **row_kw)
        gt_spec = pl.BlockSpec((d, block_n), lambda i, j: (0, j), **col_kw)
        sqh_spec = pl.BlockSpec((1, block_n), lambda i, j: (0, j), **col_kw)
        lrow_spec = pl.BlockSpec((1, block_n), lambda i, j: (0, j), **col_kw)
        lcol_spec = pl.BlockSpec((block_m, 1), lambda i, j: (i, 0), **row_kw)
        out_spec = pl.BlockSpec((1, 1), lambda i, j: (0, 0))

        if not has_scores:
            return pl.pallas_call(
                functools.partial(_rank_kernel, block_m=block_m,
                                  block_n=block_n, n_rows=n),
                grid=grid,
                in_specs=[fq_spec, gt_spec, sqh_spec, lrow_spec, lcol_spec],
                out_specs=out_spec,
                out_shape=jax.ShapeDtypeStruct((1, 1), jnp.float32),
                scratch_shapes=scratch,
                compiler_params=cparams,
            )(fq, gt, sqh, lab_row, lab_col)

        scores_spec = pl.BlockSpec((block_m, c), lambda i, j: (i, 0), **row_kw)
        return pl.pallas_call(
            functools.partial(_fused_kernel, block_m=block_m,
                              block_n=block_n, n_rows=n),
            grid=grid,
            in_specs=[fq_spec, gt_spec, sqh_spec, lrow_spec, lcol_spec, scores_spec],
            out_specs=(out_spec, out_spec),
            out_shape=(jax.ShapeDtypeStruct((1, 1), jnp.float32),
                       jax.ShapeDtypeStruct((1, 1), jnp.float32)),
            scratch_shapes=scratch,
            compiler_params=cparams,
        )(fq, gt, sqh, lab_row, lab_col, scores_p)

    try:
        out = _call(use_buffered=True)
    except Exception:
        # pl.Buffered(1) not supported on this JAX version -> default buffering.
        out = _call(use_buffered=False)

    if not has_scores:
        return {"rank1": out[0, 0]}
    rank1, cls_acc = out
    return {"rank1": rank1[0, 0], "cls_accuracy": cls_acc[0, 0]}


# --------------------------------------------------------------------------
# ReID_Metric wrapper — mirrors the PyTorch forward() semantics exactly:
#   2 args -> (feats, labels)          : only ranking metric
#   3 args -> (scores, feats, labels)  : ranking metric updated with cls metric
# The default implementation fuses both sub-metrics into one pallas_call;
# custom sub-metric callables may still be injected for API parity.
# --------------------------------------------------------------------------
class ReIDMetric:
    def __init__(self, metric_cls=None, metric_rank=None):
        self.metric_cls = metric_cls
        self.metric_rank = metric_rank

    def __call__(self, *args):
        if len(args) == 2:
            scores = None
            feats, labels = args
        elif len(args) == 3:
            scores, feats, labels = args
        else:
            raise ValueError(
                "Expected to have 2 or 3 inputs,but got {}".format(len(args))
            )
        if self.metric_rank is not None:
            metrics = self.metric_rank(feats, labels)
            if scores is not None and self.metric_cls is not None:
                metrics.update(self.metric_cls(scores, labels))
            return metrics
        return reid_metrics_pallas(feats, labels, scores)


if __name__ == "__main__":
    key = jax.random.PRNGKey(0)
    k1, k2, k3 = jax.random.split(key, 3)

    N, D, C = 8, 32, 16           # small shapes: batch=8, feat-dim=32, classes=16
    feats = jax.random.normal(k1, (N, D), dtype=jnp.float32)
    labels = jax.random.randint(k2, (N,), 0, 4, dtype=jnp.int32)
    scores = jax.random.normal(k3, (N, C), dtype=jnp.float32)

    metric = ReIDMetric()

    # 2-arg path (feats, labels)
    m2 = metric(feats, labels)
    # 3-arg path (scores, feats, labels)
    m3 = metric(scores, feats, labels)

    jax.block_until_ready(m2["rank1"])
    jax.block_until_ready(m3["rank1"])
    jax.block_until_ready(m3["cls_accuracy"])
    print("KERNEL_OK")
</pallas_src>

<mosaic_0001>
module attributes {stable_mosaic.version = 11 : i64} {
  func.func @_rank_kernel(%arg0: i32, %arg1: i32, %arg2: memref<16x32xbf16, #tpu.memory_space<vmem>>, %arg3: memref<32x128xbf16, #tpu.memory_space<vmem>>, %arg4: memref<1x128xf32, #tpu.memory_space<vmem>>, %arg5: memref<1x128xi32, #tpu.memory_space<vmem>>, %arg6: memref<16x1xi32, #tpu.memory_space<vmem>>, %arg7: memref<1x1xf32, #tpu.memory_space<vmem>>, %arg8: memref<16x1xf32, #tpu.memory_space<vmem>>, %arg9: memref<16x1xf32, #tpu.memory_space<vmem>>) attributes {dimension_semantics = [#tpu.dimension_semantics<arbitrary>, #tpu.dimension_semantics<arbitrary>], iteration_bounds = array<i64: 1, 1>, scalar_prefetch = 0 : i64, scratch_operands = 2 : i64, tpu.core_type = #tpu.core_type<tc>, window_params = [{pipeline_mode = #tpu.pipeline_mode<synchronous>, transform_indices = @transform_0, window_bounds = array<i64: 16, 32>}, {pipeline_mode = #tpu.pipeline_mode<synchronous>, transform_indices = @transform_1, window_bounds = array<i64: 32, 128>}, {pipeline_mode = #tpu.pipeline_mode<synchronous>, transform_indices = @transform_2, window_bounds = array<i64: 1, 128>}, {pipeline_mode = #tpu.pipeline_mode<synchronous>, transform_indices = @transform_3, window_bounds = array<i64: 1, 128>}, {pipeline_mode = #tpu.pipeline_mode<synchronous>, transform_indices = @transform_4, window_bounds = array<i64: 16, 1>}, {pipeline_mode = #tpu.pipeline_mode<synchronous>, transform_indices = @transform_5, window_bounds = array<i64: 1, 1>}]} {
    %c0_i32 = arith.constant 0 : i32
    %0 = arith.cmpi eq, %arg0, %c0_i32 : i32
    %c0_i32_0 = arith.constant 0 : i32
    %1 = arith.cmpi eq, %arg1, %c0_i32_0 : i32
    %2 = arith.andi %0, %1 : i1
    %3 = arith.extui %2 : i1 to i32
    %c0_i32_1 = arith.constant 0 : i32
    %4 = arith.cmpi ne, %3, %c0_i32_1 : i32
    scf.if %4 {
      %cst_30 = arith.constant 0.000000e+00 : f32
      %53 = vector.broadcast %cst_30 : f32 to vector<1x1xf32>
      %c0_31 = arith.constant 0 : index
      %c0_32 = arith.constant 0 : index
      %54 = vector.load %arg7[%c0_31, %c0_32] : memref<1x1xf32, #tpu.memory_space<vmem>>, vector<1x1xf32>
      tpu.vector_store %arg7[%c0_31, %c0_32], %53 {strides = array<i32>} : memref<1x1xf32, #tpu.memory_space<vmem>>, vector<1x1xf32>,
    } else {
    }
    %c0_i32_2 = arith.constant 0 : i32
    %5 = arith.cmpi eq, %arg1, %c0_i32_2 : i32
    %6 = arith.extui %5 : i1 to i32
    %c0_i32_3 = arith.constant 0 : i32
    %7 = arith.cmpi ne, %6, %c0_i32_3 : i32
    scf.if %7 {
      %cst_30 = arith.constant 1.000000e+30 : f32
      %53 = vector.broadcast %cst_30 : f32 to vector<16x1xf32>
      %c0_31 = arith.constant 0 : index
      %c0_32 = arith.constant 0 : index
      %54 = vector.load %arg8[%c0_31, %c0_32] : memref<16x1xf32, #tpu.memory_space<vmem>>, vector<16x1xf32>
      tpu.vector_store %arg8[%c0_31, %c0_32], %53 {strides = array<i32>} : memref<16x1xf32, #tpu.memory_space<vmem>>, vector<16x1xf32>,
      %cst_33 = arith.constant 1.000000e+30 : f32
      %55 = vector.broadcast %cst_33 : f32 to vector<16x1xf32>
      %c0_34 = arith.constant 0 : index
      %c0_35 = arith.constant 0 : index
      %56 = vector.load %arg9[%c0_34, %c0_35] : memref<16x1xf32, #tpu.memory_space<vmem>>, vector<16x1xf32>
      tpu.vector_store %arg9[%c0_34, %c0_35], %55 {strides = array<i32>} : memref<16x1xf32, #tpu.memory_space<vmem>>, vector<16x1xf32>,
    } else {
    }
    %c0 = arith.constant 0 : index
    %c0_4 = arith.constant 0 : index
    %8 = vector.load %arg2[%c0, %c0_4] : memref<16x32xbf16, #tpu.memory_space<vmem>>, vector<16x32xbf16>
    %c0_5 = arith.constant 0 : index
    %c0_6 = arith.constant 0 : index
    %9 = vector.load %arg3[%c0_5, %c0_6] : memref<32x128xbf16, #tpu.memory_space<vmem>>, vector<32x128xbf16>
    %cst = arith.constant dense<0.000000e+00> : vector<16x128xf32>
    %10 = tpu.matmul %8, %9, %cst {dimension_numbers = #tpu.dot_dimension_numbers<[1], [0], [0], [1], [0, 0, 1, 1], [], []>} : vector<16x32xbf16>, vector<32x128xbf16>, vector<16x128xf32> -> vector<16x128xf32>
    %c0_7 = arith.constant 0 : index
    %c0_8 = arith.constant 0 : index
    %11 = vector.load %arg4[%c0_7, %c0_8] : memref<1x128xf32, #tpu.memory_space<vmem>>, vector<1x128xf32>
    %12 = vector.broadcast %11 : vector<1x128xf32> to vector<16x128xf32>
    %13 = arith.subf %12, %10 : vector<16x128xf32>
    %c0_9 = arith.constant 0 : index
    %c0_10 = arith.constant 0 : index
    %14 = vector.load %arg6[%c0_9, %c0_10] : memref<16x1xi32, #tpu.memory_space<vmem>>, vector<16x1xi32>
    %c0_11 = arith.constant 0 : index
    %c0_12 = arith.constant 0 : index
    %15 = vector.load %arg5[%c0_11, %c0_12] : memref<1x128xi32, #tpu.memory_space<vmem>>, vector<1x128xi32>
    %16 = vector.broadcast %14 : vector<16x1xi32> to vector<16x128xi32>
    %17 = vector.broadcast %15 : vector<1x128xi32> to vector<16x128xi32>
    %18 = arith.cmpi eq, %16, %17 : vector<16x128xi32>
    %c16_i32 = arith.constant 16 : i32
    %19 = arith.muli %arg0, %c16_i32 : i32
    %20 = tpu.iota {dimensions = array<i32: 0>} : vector<16x1xi32>
    %21 = vector.broadcast %19 : i32 to vector<16x1xi32>
    %22 = arith.addi %21, %20 : vector<16x1xi32>
    %c128_i32 = arith.constant 128 : i32
    %23 = arith.muli %arg1, %c128_i32 : i32
    %24 = tpu.iota {dimensions = array<i32: 1>} : vector<1x128xi32>
    %25 = vector.broadcast %23 : i32 to vector<1x128xi32>
    %26 = arith.addi %25, %24 : vector<1x128xi32>
    %27 = vector.broadcast %22 : vector<16x1xi32> to vector<16x128xi32>
    %28 = vector.broadcast %26 : vector<1x128xi32> to vector<16x128xi32>
    %29 = arith.cmpi ne, %27, %28 : vector<16x128xi32>
    %30 = arith.andi %18, %29 : vector<16x128xi1>
    %cst_13 = arith.constant 1.000000e+30 : f32
    %31 = vector.broadcast %cst_13 : f32 to vector<16x128xf32>
    %32 = arith.select %30, %13, %31 : vector<16x128xi1>, vector<16x128xf32>
    %cst_14 = arith.constant dense<0x7F800000> : vector<16xf32>
    %33 = vector.multi_reduction <minimumf>, %32, %cst_14 [1] : vector<16x128xf32> to vector<16xf32>
    %34 = vector.shape_cast %33 : vector<16xf32> to vector<16x1xf32>
    %cst_15 = arith.constant 1.000000e+30 : f32
    %35 = vector.broadcast %cst_15 : f32 to vector<16x128xf32>
    %36 = arith.select %18, %35, %13 : vector<16x128xi1>, vector<16x128xf32>
    %cst_16 = arith.constant dense<0x7F800000> : vector<16xf32>
    %37 = vector.multi_reduction <minimumf>, %36, %cst_16 [1] : vector<16x128xf32> to vector<16xf32>
    %38 = vector.shape_cast %37 : vector<16xf32> to vector<16x1xf32>
    %c0_17 = arith.constant 0 : index
    %c0_18 = arith.constant 0 : index
    %39 = vector.load %arg8[%c0_17, %c0_18] : memref<16x1xf32, #tpu.memory_space<vmem>>, vector<16x1xf32>
    %40 = arith.minimumf %39, %34 : vector<16x1xf32>
    %c0_19 = arith.constant 0 : index
    %c0_20 = arith.constant 0 : index
    %41 = vector.load %arg8[%c0_19, %c0_20] : memref<16x1xf32, #tpu.memory_space<vmem>>, vector<16x1xf32>
    tpu.vector_store %arg8[%c0_19, %c0_20], %40 {strides = array<i32>} : memref<16x1xf32, #tpu.memory_space<vmem>>, vector<16x1xf32>,
    %c0_21 = arith.constant 0 : index
    %c0_22 = arith.constant 0 : index
    %42 = vector.load %arg9[%c0_21, %c0_22] : memref<16x1xf32, #tpu.memory_space<vmem>>, vector<16x1xf32>
    %43 = arith.minimumf %42, %38 : vector<16x1xf32>
    %c0_23 = arith.constant 0 : index
    %c0_24 = arith.constant 0 : index
    %44 = vector.load %arg9[%c0_23, %c0_24] : memref<16x1xf32, #tpu.memory_space<vmem>>, vector<16x1xf32>
    tpu.vector_store %arg9[%c0_23, %c0_24], %43 {strides = array<i32>} : memref<16x1xf32, #tpu.memory_space<vmem>>, vector<16x1xf32>,
    %c0_i32_25 = arith.constant 0 : i32
    %45 = arith.cmpi eq, %arg1, %c0_i32_25 : i32
    %46 = arith.extui %45 : i1 to i32
    %c0_i32_26 = arith.constant 0 : i32
    %47 = arith.cmpi ne, %46, %c0_i32_26 : i32
    scf.if %47 {
      %c0_30 = arith.constant 0 : index
      %c0_31 = arith.constant 0 : index
      %53 = vector.load %arg7[%c0_30, %c0_31] : memref<1x1xf32, #tpu.memory_space<vmem>>, vector<1x1xf32>
      %c16_i32_32 = arith.constant 16 : i32
      %54 = arith.muli %arg0, %c16_i32_32 : i32
      %55 = tpu.iota {dimensions = array<i32: 0>} : vector<16x1xi32>
      %56 = vector.broadcast %54 : i32 to vector<16x1xi32>
      %57 = arith.addi %56, %55 : vector<16x1xi32>
      %c8_i32 = arith.constant 8 : i32
      %58 = vector.broadcast %c8_i32 : i32 to vector<16x1xi32>
      %59 = arith.cmpi slt, %57, %58 : vector<16x1xi32>
      %c0_33 = arith.constant 0 : index
      %c0_34 = arith.constant 0 : index
      %60 = vector.load %arg8[%c0_33, %c0_34] : memref<16x1xf32, #tpu.memory_space<vmem>>, vector<16x1xf32>
      %c0_35 = arith.constant 0 : index
      %c0_36 = arith.constant 0 : index
      %61 = vector.load %arg9[%c0_35, %c0_36] : memref<16x1xf32, #tpu.memory_space<vmem>>, vector<16x1xf32>
      %62 = arith.cmpf olt, %60, %61 : vector<16x1xf32>
      %63 = arith.andi %59, %62 : vector<16x1xi1>
      %cst_37 = arith.constant 1.000000e+00 : f32
      %cst_38 = arith.constant 0.000000e+00 : f32
      %64 = vector.broadcast %cst_37 : f32 to vector<16x1xf32>
      %65 = vector.broadcast %cst_38 : f32 to vector<16x1xf32>
      %66 = arith.select %63, %64, %65 : vector<16x1xi1>, vector<16x1xf32>
      %67 = vector.shape_cast %66 : vector<16x1xf32> to vector<1x16x1xf32>
      %cst_39 = arith.constant dense<0.000000e+00> : vector<1xf32>
      %68 = vector.multi_reduction <add>, %67, %cst_39 [1, 2] : vector<1x16x1xf32> to vector<1xf32>
      %69 = vector.shape_cast %68 : vector<1xf32> to vector<1x1x1xf32>
      %70 = vector.extract %69[0, 0, 0] : f32 from vector<1x1x1xf32>
      %71 = vector.broadcast %70 : f32 to vector<1x1xf32>
      %72 = arith.addf %53, %71 : vector<1x1xf32>
      %c0_40 = arith.constant 0 : index
      %c0_41 = arith.constant 0 : index
      %73 = vector.load %arg7[%c0_40, %c0_41] : memref<1x1xf32, #tpu.memory_space<vmem>>, vector<1x1xf32>
      tpu.vector_store %arg7[%c0_40, %c0_41], %72 {strides = array<i32>} : memref<1x1xf32, #tpu.memory_space<vmem>>, vector<1x1xf32>,
    } else {
    }
    %c0_i32_27 = arith.constant 0 : i32
    %48 = arith.cmpi eq, %arg0, %c0_i32_27 : i32
    %c0_i32_28 = arith.constant 0 : i32
    %49 = arith.cmpi eq, %arg1, %c0_i32_28 : i32
    %50 = arith.andi %48, %49 : i1
    %51 = arith.extui %50 : i1 to i32
    %c0_i32_29 = arith.constant 0 : i32
    %52 = arith.cmpi ne, %51, %c0_i32_29 : i32
    scf.if %52 {
      %c0_30 = arith.constant 0 : index
      %c0_31 = arith.constant 0 : index
      %53 = vector.load %arg7[%c0_30, %c0_31] : memref<1x1xf32, #tpu.memory_space<vmem>>, vector<1x1xf32>
      %cst_32 = arith.constant 1.250000e-01 : f32
      %54 = vector.broadcast %cst_32 : f32 to vector<1x1xf32>
      %55 = arith.mulf %53, %54 : vector<1x1xf32>
      %c0_33 = arith.constant 0 : index
      %c0_34 = arith.constant 0 : index
      %56 = vector.load %arg7[%c0_33, %c0_34] : memref<1x1xf32, #tpu.memory_space<vmem>>, vector<1x1xf32>
      tpu.vector_store %arg7[%c0_33, %c0_34], %55 {strides = array<i32>} : memref<1x1xf32, #tpu.memory_space<vmem>>, vector<1x1xf32>,
    } else {
    }
    return
  }
  func.func @transform_0(%arg0: i32, %arg1: i32) -> (i32, i32) {
    %c0_i32 = arith.constant 0 : i32
    %c0_i32_0 = arith.constant 0 : i32
    return %arg0, %c0_i32 : i32, i32
  }
  func.func @transform_1(%arg0: i32, %arg1: i32) -> (i32, i32) {
    %c0_i32 = arith.constant 0 : i32
    %c0_i32_0 = arith.constant 0 : i32
    return %c0_i32, %arg1 : i32, i32
  }
  func.func @transform_2(%arg0: i32, %arg1: i32) -> (i32, i32) {
    %c0_i32 = arith.constant 0 : i32
    %c0_i32_0 = arith.constant 0 : i32
    return %c0_i32, %arg1 : i32, i32
  }
  func.func @transform_3(%arg0: i32, %arg1: i32) -> (i32, i32) {
    %c0_i32 = arith.constant 0 : i32
    %c0_i32_0 = arith.constant 0 : i32
    return %c0_i32, %arg1 : i32, i32
  }
  func.func @transform_4(%arg0: i32, %arg1: i32) -> (i32, i32) {
    %c0_i32 = arith.constant 0 : i32
    %c0_i32_0 = arith.constant 0 : i32
    return %arg0, %c0_i32 : i32, i32
  }
  func.func @transform_5(%arg0: i32, %arg1: i32) -> (i32, i32) {
    %c0_i32 = arith.constant 0 : i32
    %c0_i32_0 = arith.constant 0 : i32
    %c0_i32_1 = arith.constant 0 : i32
    return %c0_i32, %c0_i32_0 : i32, i32
  }
}

module attributes {stable_mosaic.version = 11 : i64} {
  func.func @_rank_kernel(%arg0: i32, %arg1: i32, %arg2: memref<16x32xbf16, #tpu.memory_space<vmem>>, %arg3: memref<32x128xbf16, #tpu.memory_space<vmem>>, %arg4: memref<1x128xf32, #tpu.memory_space<vmem>>, %arg5: memref<1x128xi32, #tpu.memory_space<vmem>>, %arg6: memref<16x1xi32, #tpu.memory_space<vmem>>, %arg7: memref<1x1xf32, #tpu.memory_space<vmem>>, %arg8: memref<16x1xf32, #tpu.memory_space<vmem>>, %arg9: memref<16x1xf32, #tpu.memory_space<vmem>>) attributes {dimension_semantics = [#tpu.dimension_semantics<arbitrary>, #tpu.dimension_semantics<arbitrary>], iteration_bounds = array<i64: 1, 1>, scalar_prefetch = 0 : i64, scratch_operands = 2 : i64, tpu.core_type = #tpu.core_type<tc>, window_params = [{transform_indices = @transform_0, window_bounds = array<i64: 16, 32>}, {transform_indices = @transform_1, window_bounds = array<i64: 32, 128>}, {transform_indices = @transform_2, window_bounds = array<i64: 1, 128>}, {transform_indices = @transform_3, window_bounds = array<i64: 1, 128>}, {transform_indices = @transform_4, window_bounds = array<i64: 16, 1>}, {pipeline_mode = #tpu.pipeline_mode<synchronous>, transform_indices = @transform_5, window_bounds = array<i64: 1, 1>}]} {
    %c0_i32 = arith.constant 0 : i32
    %0 = arith.cmpi eq, %arg0, %c0_i32 : i32
    %c0_i32_0 = arith.constant 0 : i32
    %1 = arith.cmpi eq, %arg1, %c0_i32_0 : i32
    %2 = arith.andi %0, %1 : i1
    %3 = arith.extui %2 : i1 to i32
    %c0_i32_1 = arith.constant 0 : i32
    %4 = arith.cmpi ne, %3, %c0_i32_1 : i32
    scf.if %4 {
      %cst_30 = arith.constant 0.000000e+00 : f32
      %53 = vector.broadcast %cst_30 : f32 to vector<1x1xf32>
      %c0_31 = arith.constant 0 : index
      %c0_32 = arith.constant 0 : index
      %54 = vector.load %arg7[%c0_31, %c0_32] : memref<1x1xf32, #tpu.memory_space<vmem>>, vector<1x1xf32>
      tpu.vector_store %arg7[%c0_31, %c0_32], %53 {strides = array<i32>} : memref<1x1xf32, #tpu.memory_space<vmem>>, vector<1x1xf32>,
    } else {
    }
    %c0_i32_2 = arith.constant 0 : i32
    %5 = arith.cmpi eq, %arg1, %c0_i32_2 : i32
    %6 = arith.extui %5 : i1 to i32
    %c0_i32_3 = arith.constant 0 : i32
    %7 = arith.cmpi ne, %6, %c0_i32_3 : i32
    scf.if %7 {
      %cst_30 = arith.constant 1.000000e+30 : f32
      %53 = vector.broadcast %cst_30 : f32 to vector<16x1xf32>
      %c0_31 = arith.constant 0 : index
      %c0_32 = arith.constant 0 : index
      %54 = vector.load %arg8[%c0_31, %c0_32] : memref<16x1xf32, #tpu.memory_space<vmem>>, vector<16x1xf32>
      tpu.vector_store %arg8[%c0_31, %c0_32], %53 {strides = array<i32>} : memref<16x1xf32, #tpu.memory_space<vmem>>, vector<16x1xf32>,
      %cst_33 = arith.constant 1.000000e+30 : f32
      %55 = vector.broadcast %cst_33 : f32 to vector<16x1xf32>
      %c0_34 = arith.constant 0 : index
      %c0_35 = arith.constant 0 : index
      %56 = vector.load %arg9[%c0_34, %c0_35] : memref<16x1xf32, #tpu.memory_space<vmem>>, vector<16x1xf32>
      tpu.vector_store %arg9[%c0_34, %c0_35], %55 {strides = array<i32>} : memref<16x1xf32, #tpu.memory_space<vmem>>, vector<16x1xf32>,
    } else {
    }
    %c0 = arith.constant 0 : index
    %c0_4 = arith.constant 0 : index
    %8 = vector.load %arg2[%c0, %c0_4] : memref<16x32xbf16, #tpu.memory_space<vmem>>, vector<16x32xbf16>
    %c0_5 = arith.constant 0 : index
    %c0_6 = arith.constant 0 : index
    %9 = vector.load %arg3[%c0_5, %c0_6] : memref<32x128xbf16, #tpu.memory_space<vmem>>, vector<32x128xbf16>
    %cst = arith.constant dense<0.000000e+00> : vector<16x128xf32>
    %10 = tpu.matmul %8, %9, %cst {dimension_numbers = #tpu.dot_dimension_numbers<[1], [0], [0], [1], [0, 0, 1, 1], [], []>} : vector<16x32xbf16>, vector<32x128xbf16>, vector<16x128xf32> -> vector<16x128xf32>
    %c0_7 = arith.constant 0 : index
    %c0_8 = arith.constant 0 : index
    %11 = vector.load %arg4[%c0_7, %c0_8] : memref<1x128xf32, #tpu.memory_space<vmem>>, vector<1x128xf32>
    %12 = vector.broadcast %11 : vector<1x128xf32> to vector<16x128xf32>
    %13 = arith.subf %12, %10 : vector<16x128xf32>
    %c0_9 = arith.constant 0 : index
    %c0_10 = arith.constant 0 : index
    %14 = vector.load %arg6[%c0_9, %c0_10] : memref<16x1xi32, #tpu.memory_space<vmem>>, vector<16x1xi32>
    %c0_11 = arith.constant 0 : index
    %c0_12 = arith.constant 0 : index
    %15 = vector.load %arg5[%c0_11, %c0_12] : memref<1x128xi32, #tpu.memory_space<vmem>>, vector<1x128xi32>
    %16 = vector.broadcast %14 : vector<16x1xi32> to vector<16x128xi32>
    %17 = vector.broadcast %15 : vector<1x128xi32> to vector<16x128xi32>
    %18 = arith.cmpi eq, %16, %17 : vector<16x128xi32>
    %c16_i32 = arith.constant 16 : i32
    %19 = arith.muli %arg0, %c16_i32 : i32
    %20 = tpu.iota {dimensions = array<i32: 0>} : vector<16x1xi32>
    %21 = vector.broadcast %19 : i32 to vector<16x1xi32>
    %22 = arith.addi %21, %20 : vector<16x1xi32>
    %c128_i32 = arith.constant 128 : i32
    %23 = arith.muli %arg1, %c128_i32 : i32
    %24 = tpu.iota {dimensions = array<i32: 1>} : vector<1x128xi32>
    %25 = vector.broadcast %23 : i32 to vector<1x128xi32>
    %26 = arith.addi %25, %24 : vector<1x128xi32>
    %27 = vector.broadcast %22 : vector<16x1xi32> to vector<16x128xi32>
    %28 = vector.broadcast %26 : vector<1x128xi32> to vector<16x128xi32>
    %29 = arith.cmpi ne, %27, %28 : vector<16x128xi32>
    %30 = arith.andi %18, %29 : vector<16x128xi1>
    %cst_13 = arith.constant 1.000000e+30 : f32
    %31 = vector.broadcast %cst_13 : f32 to vector<16x128xf32>
    %32 = arith.select %30, %13, %31 : vector<16x128xi1>, vector<16x128xf32>
    %cst_14 = arith.constant dense<0x7F800000> : vector<16xf32>
    %33 = vector.multi_reduction <minimumf>, %32, %cst_14 [1] : vector<16x128xf32> to vector<16xf32>
    %34 = vector.shape_cast %33 : vector<16xf32> to vector<16x1xf32>
    %cst_15 = arith.constant 1.000000e+30 : f32
    %35 = vector.broadcast %cst_15 : f32 to vector<16x128xf32>
    %36 = arith.select %18, %35, %13 : vector<16x128xi1>, vector<16x128xf32>
    %cst_16 = arith.constant dense<0x7F800000> : vector<16xf32>
    %37 = vector.multi_reduction <minimumf>, %36, %cst_16 [1] : vector<16x128xf32> to vector<16xf32>
    %38 = vector.shape_cast %37 : vector<16xf32> to vector<16x1xf32>
    %c0_17 = arith.constant 0 : index
    %c0_18 = arith.constant 0 : index
    %39 = vector.load %arg8[%c0_17, %c0_18] : memref<16x1xf32, #tpu.memory_space<vmem>>, vector<16x1xf32>
    %40 = arith.minimumf %39, %34 : vector<16x1xf32>
    %c0_19 = arith.constant 0 : index
    %c0_20 = arith.constant 0 : index
    %41 = vector.load %arg8[%c0_19, %c0_20] : memref<16x1xf32, #tpu.memory_space<vmem>>, vector<16x1xf32>
    tpu.vector_store %arg8[%c0_19, %c0_20], %40 {strides = array<i32>} : memref<16x1xf32, #tpu.memory_space<vmem>>, vector<16x1xf32>,
    %c0_21 = arith.constant 0 : index
    %c0_22 = arith.constant 0 : index
    %42 = vector.load %arg9[%c0_21, %c0_22] : memref<16x1xf32, #tpu.memory_space<vmem>>, vector<16x1xf32>
    %43 = arith.minimumf %42, %38 : vector<16x1xf32>
    %c0_23 = arith.constant 0 : index
    %c0_24 = arith.constant 0 : index
    %44 = vector.load %arg9[%c0_23, %c0_24] : memref<16x1xf32, #tpu.memory_space<vmem>>, vector<16x1xf32>
    tpu.vector_store %arg9[%c0_23, %c0_24], %43 {strides = array<i32>} : memref<16x1xf32, #tpu.memory_space<vmem>>, vector<16x1xf32>,
    %c0_i32_25 = arith.constant 0 : i32
    %45 = arith.cmpi eq, %arg1, %c0_i32_25 : i32
    %46 = arith.extui %45 : i1 to i32
    %c0_i32_26 = arith.constant 0 : i32
    %47 = arith.cmpi ne, %46, %c0_i32_26 : i32
    scf.if %47 {
      %c0_30 = arith.constant 0 : index
      %c0_31 = arith.constant 0 : index
      %53 = vector.load %arg7[%c0_30, %c0_31] : memref<1x1xf32, #tpu.memory_space<vmem>>, vector<1x1xf32>
      %c16_i32_32 = arith.constant 16 : i32
      %54 = arith.muli %arg0, %c16_i32_32 : i32
      %55 = tpu.iota {dimensions = array<i32: 0>} : vector<16x1xi32>
      %56 = vector.broadcast %54 : i32 to vector<16x1xi32>
      %57 = arith.addi %56, %55 : vector<16x1xi32>
      %c8_i32 = arith.constant 8 : i32
      %58 = vector.broadcast %c8_i32 : i32 to vector<16x1xi32>
      %59 = arith.cmpi slt, %57, %58 : vector<16x1xi32>
      %c0_33 = arith.constant 0 : index
      %c0_34 = arith.constant 0 : index
      %60 = vector.load %arg8[%c0_33, %c0_34] : memref<16x1xf32, #tpu.memory_space<vmem>>, vector<16x1xf32>
      %c0_35 = arith.constant 0 : index
      %c0_36 = arith.constant 0 : index
      %61 = vector.load %arg9[%c0_35, %c0_36] : memref<16x1xf32, #tpu.memory_space<vmem>>, vector<16x1xf32>
      %62 = arith.cmpf olt, %60, %61 : vector<16x1xf32>
      %63 = arith.andi %59, %62 : vector<16x1xi1>
      %cst_37 = arith.constant 1.000000e+00 : f32
      %cst_38 = arith.constant 0.000000e+00 : f32
      %64 = vector.broadcast %cst_37 : f32 to vector<16x1xf32>
      %65 = vector.broadcast %cst_38 : f32 to vector<16x1xf32>
      %66 = arith.select %63, %64, %65 : vector<16x1xi1>, vector<16x1xf32>
      %67 = vector.shape_cast %66 : vector<16x1xf32> to vector<1x16x1xf32>
      %cst_39 = arith.constant dense<0.000000e+00> : vector<1xf32>
      %68 = vector.multi_reduction <add>, %67, %cst_39 [1, 2] : vector<1x16x1xf32> to vector<1xf32>
      %69 = vector.shape_cast %68 : vector<1xf32> to vector<1x1x1xf32>
      %70 = vector.extract %69[0, 0, 0] : f32 from vector<1x1x1xf32>
      %71 = vector.broadcast %70 : f32 to vector<1x1xf32>
      %72 = arith.addf %53, %71 : vector<1x1xf32>
      %c0_40 = arith.constant 0 : index
      %c0_41 = arith.constant 0 : index
      %73 = vector.load %arg7[%c0_40, %c0_41] : memref<1x1xf32, #tpu.memory_space<vmem>>, vector<1x1xf32>
      tpu.vector_store %arg7[%c0_40, %c0_41], %72 {strides = array<i32>} : memref<1x1xf32, #tpu.memory_space<vmem>>, vector<1x1xf32>,
    } else {
    }
    %c0_i32_27 = arith.constant 0 : i32
    %48 = arith.cmpi eq, %arg0, %c0_i32_27 : i32
    %c0_i32_28 = arith.constant 0 : i32
    %49 = arith.cmpi eq, %arg1, %c0_i32_28 : i32
    %50 = arith.andi %48, %49 : i1
    %51 = arith.extui %50 : i1 to i32
    %c0_i32_29 = arith.constant 0 : i32
    %52 = arith.cmpi ne, %51, %c0_i32_29 : i32
    scf.if %52 {
      %c0_30 = arith.constant 0 : index
      %c0_31 = arith.constant 0 : index
      %53 = vector.load %arg7[%c0_30, %c0_31] : memref<1x1xf32, #tpu.memory_space<vmem>>, vector<1x1xf32>
      %cst_32 = arith.constant 1.250000e-01 : f32
      %54 = vector.broadcast %cst_32 : f32 to vector<1x1xf32>
      %55 = arith.mulf %53, %54 : vector<1x1xf32>
      %c0_33 = arith.constant 0 : index
      %c0_34 = arith.constant 0 : index
      %56 = vector.load %arg7[%c0_33, %c0_34] : memref<1x1xf32, #tpu.memory_space<vmem>>, vector<1x1xf32>
      tpu.vector_store %arg7[%c0_33, %c0_34], %55 {strides = array<i32>} : memref<1x1xf32, #tpu.memory_space<vmem>>, vector<1x1xf32>,
    } else {
    }
    return
  }
  func.func @transform_0(%arg0: i32, %arg1: i32) -> (i32, i32) {
    %c0_i32 = arith.constant 0 : i32
    %c0_i32_0 = arith.constant 0 : i32
    return %arg0, %c0_i32 : i32, i32
  }
  func.func @transform_1(%arg0: i32, %arg1: i32) -> (i32, i32) {
    %c0_i32 = arith.constant 0 : i32
    %c0_i32_0 = arith.constant 0 : i32
    return %c0_i32, %arg1 : i32, i32
  }
  func.func @transform_2(%arg0: i32, %arg1: i32) -> (i32, i32) {
    %c0_i32 = arith.constant 0 : i32
    %c0_i32_0 = arith.constant 0 : i32
    return %c0_i32, %arg1 : i32, i32
  }
  func.func @transform_3(%arg0: i32, %arg1: i32) -> (i32, i32) {
    %c0_i32 = arith.constant 0 : i32
    %c0_i32_0 = arith.constant 0 : i32
    return %c0_i32, %arg1 : i32, i32
  }
  func.func @transform_4(%arg0: i32, %arg1: i32) -> (i32, i32) {
    %c0_i32 = arith.constant 0 : i32
    %c0_i32_0 = arith.constant 0 : i32
    return %arg0, %c0_i32 : i32, i32
  }
  func.func @transform_5(%arg0: i32, %arg1: i32) -> (i32, i32) {
    %c0_i32 = arith.constant 0 : i32
    %c0_i32_0 = arith.constant 0 : i32
    %c0_i32_1 = arith.constant 0 : i32
    return %c0_i32, %c0_i32_0 : i32, i32
  }
}

</mosaic_0001>

<bundles_post_ra>
// kernel: tpu_custom_call.1
= control target key start
LH: loop header
LB: loop body
LE: loop exit
PB: predicated region body
PF: predicated region fallthrough
CT: control target
= control target key end

     0   :  { %10 = vsyncpa [#allocation5], 0  ;;  %s410_s0 = inlined_call_operand.hbm [shape: bf16[16,32], index: 0, kind: input, shape index: {}]   ;;  %s411_s1 = inlined_call_operand.vmem [shape: bf16[32,128], index: 1, kind: input, shape index: {}]   ;;  %s412_s2 = inlined_call_operand.vmem [shape: f32[1,128], index: 2, kind: input, shape index: {}]   ;;  %s413_s3 = inlined_call_operand.vmem [shape: s32[1,128], index: 3, kind: input, shape index: {}]   ;;  %s414_s4 = inlined_call_operand.vmem [shape: s32[16,1], index: 4, kind: input, shape index: {}]   ;;  %s415_s5 = inlined_call_operand.hbm [shape: f32[1,1], index: 5, kind: output, shape index: {}]  }
   0x1   :  { %11 = vsyncpa [#allocation6], 0  ;;  %s318_s18 = smov [#allocation4]   ;;  %s270_s22 = scalar_lea.hbm %s410_s0, 128 }
   0x2   :  { %s17_s19 = sshll.u32 %s318_s18, 4  ;;  %p271_p0 = scmp.ne.s32.totalorder %s410_s0, %s270_s22  ;;  %s18_s19 = int_to_ptr.vmem [resolvable:$true] %s17_s19 }
   0x3   :  { %p274_p1 = scmp.lt.u32.totalorder %s270_s22, %s410_s0 }
   0x5   :  { %p276_p2 = pnand %p274_p1, %p271_p0 }
   0x7   :  { %279 = shalt.err (!%p276_p2)
}
   0x8   :  { %s280_s27 = scalar_lea.vmem %s18_s19, 128  ;;  %p285_p4 = scmp.lt.s32.totalorder %s18_s19, %s18_s19 }
   0x9   :  { %p281_p3 = scmp.ne.s32.totalorder %s18_s19, %s280_s27  ;;  %p286_p5 = scmp.lt.s32.totalorder %s280_s27, %s280_s27 }
   0xb   :  { %p287_p6 = por %p286_p5, %p285_p4 }
   0xd   :  { %p288_p7 = pnand %p287_p6, %p281_p3 }
   0xf   :  { %291 = shalt.err (!%p288_p7)
}
  0x10   :  { %s319_s28 = smov 64   ;;  %s320_s29 = smov 4  }
  0x11   :  { %23 = dma.hbm_to_vmem [thread:$0]  %s410_s0, 128, %s18_s19, [#allocation5], %s319_s28, %s319_s28, %s320_s29  }
  0x12   :  { %314 = dma.done.wait [#allocation5], 128  }
  0x13   :  { %315 = vsyncadd [#allocation5], 4294967168  ;;  %v321_v0 = vmov 0.0   ;;  %vm322_vm0 = vmmov 0   ;;  %v323_v1 = vmov 0   ;;  %v267_v2 = vld [vmem:[%s411_s1] sm:$0xff]   ;;  %v145_v7 = vlaneseq }
  0x14   :  { %247 = vmatprep.subr.bf16.mxu0 %v321_v0  ;;  %251 = vmatprep.mubr.msk.bf16.mxu0 %vm322_vm0, %v321_v0  ;;  %v268_v3 = vld [vmem:[%s411_s1 + $0x8] sm:$0xff]   ;;  %v129_v4 = vld [vmem:[%s414_s4] sm:$0xff]  ;;  %vm75_vm1 = vcmask 261120   ;;  %vm47_vm2 = vcmask 7168   ;;  %v324_v6 = vmov 1e+30  }
  0x15   :  { %265 = vset.pattern.permute.xlu0 %v323_v1  ;;  %266 = vset.pattern.permute.xlu1 %v323_v1  ;;  %v269_v5 = vld [vmem:[#allocation4] sm:$0xff]   ;;  %50 = vst.msk [vmem:[#allocation3] sm:$0xff] %vm47_vm2, %v324_v6  ;;  %48 = vst.msk [vmem:[#allocation2] sm:$0xff] %vm47_vm2, %v324_v6  ;;  %v146_v8 = vshrl.u32 %v145_v7, 7  ;;  %v153_v9 = vand.u32 127, %v145_v7  ;;  %v130_v31 = vld [vmem:[%s414_s4 + $0x8] sm:$0xff] }
  0x16   :  { %248 = vmatpush3.bf16.msra.mxu0 %v267_v2  ;;  %133 = vperm.xlu0 %265, %v129_v4   ;;  %49 = vst.msk [vmem:[#allocation2 + $0x8] sm:$0xff] %vm47_vm2, %v324_v6  ;;  %51 = vst.msk [vmem:[#allocation3 + $0x8] sm:$0xff] %vm47_vm2, %v324_v6  ;;  %v243_v10 = vld [vmem:[%s413_s3] ss:$0 sm:$0xff]  ;;  %vm42_vm7 = vcmask 0   ;;  %s325_s15 = smov [#allocation7]  }
  0x17   :  { %249 = vmatprep.subr.bf16.mxu0 %v321_v0  ;;  %vm156_vm4 = vcmp.ne.s32.totalorder %v146_v8, %v153_v9  ;;  %v242_v12 = vld [vmem:[%s412_s2] ss:$0 sm:$0xff]  ;;  %43 = vst.msk [vmem:[#allocation7] sm:$0x1] %vm42_vm7, %v321_v0  ;;  %v147_v32 = vadd.s32 8, %v146_v8  ;;  %s229_s16 = sshll.u32 %s325_s15, 4  ;;  %s230_s16 = int_to_ptr.vmem [resolvable:$true] %s229_s16 }
  0x18   :  { %s292_s17 = scalar_lea.vmem %s230_s16, 16  ;;  %s296_s18 = scalar_lea.vmem %s230_s16, 32 }
  0x19   :  { %vm157_vm8 = vcmp.ne.s32.totalorder %v147_v32, %v153_v9  ;;  %p293_p8 = scmp.ne.s32.totalorder %s230_s16, %s292_s17  ;;  %p297_p9 = scmp.lt.s32.totalorder %s230_s16, %s230_s16 }
  0x1a   :  { %250 = vmatpush3.bf16.msra.mxu0 %v268_v3  ;;  %p298_p10 = scmp.lt.s32.totalorder %s296_s18, %s292_s17 }
  0x1c   :  { %v179_v21 = vld [vmem:[#allocation3] sm:$0xff]  ;;  %v172_v22 = vld [vmem:[#allocation2] sm:$0xff]  ;;  %p299_p11 = por %p298_p10, %p297_p9 }
  0x1d   :  { %252 = vmatmul.mubr.msk.bf16.vlgmr.msra.gmra.mrb[0].mxu0 %vm75_vm1, %v269_v5 }
  0x1e   :  { %v188_v43 = vld [vmem:[#allocation7] sm:$0x1]  ;;  %p300_p12 = pnand %p299_p11, %p293_p8 }
  0x95   :  { %v134_v11 = vpop.permute.xlu0 %133 }
  0x96   :  { %vm142_vm3 = vcmp.eq.s32.totalorder %v134_v11, %v243_v10 }
  0x97   :  { %vm158_vm5 = vmand %vm142_vm3, %vm156_vm4 }
  0xf0   :  { %v113_v13 = vpop.f32.mrb[0].mxu0 }
  0xf1   :  { %v127_v14 = vsub.f32 %v242_v12, %v113_v13  ;;  %v253_v15 = vpop.f32.mrb[1].mxu0 }
  0xf2   :  { %v116_v16 = vpop.f32.mrb[2].mxu0 }
  0xf3   :  { %v128_v17 = vsub.f32 %v242_v12, %v116_v16  ;;  %v254_v18 = vpop.f32.mrb[3].mxu0  ;;  %v166_v19 = vsel %vm142_vm3, 1e+30, %v127_v14  ;;  %v160_v20 = vsel %vm158_vm5, %v127_v14, 1e+30 }
  0xf4   :  { %168 = vmin.xlane.f32.xlu1 %v166_v19  ;;  %162 = vmin.xlane.f32.xlu0 %v160_v20 }
 0x181   :  { %v169_v23 = vpop.xlane.xlu1 %168  ;;  %v163_v24 = vpop.xlane.xlu0 %162 }
 0x182   :  { %v181_v25 = vmin.f32 %v179_v21, %v169_v23  ;;  %v174_v26 = vmin.f32 %v172_v22, %v163_v24 }
 0x184   :  { %183 = vst.msk [vmem:[#allocation3] sm:$0xff] %vm47_vm2, %v181_v25  ;;  %177 = vst.msk [vmem:[#allocation2] sm:$0xff] %vm47_vm2, %v174_v26 }
 0x18b   :  { %v191_v27 = vld [vmem:[#allocation2] sm:$0xff]  ;;  %v193_v28 = vld [vmem:[#allocation3] sm:$0xff] }
 0x18c   :  { %vm195_vm6 = vcmp.lt.f32.partialorder %v191_v27, %v193_v28 }
 0x18d   :  { %v199_v29 = vsel %vm195_vm6, 1.0, %v321_v0 }
 0x18e   :  { %v201_v30 = vsel %vm47_vm2, %v199_v29, 0.0 }
 0x18f   :  { %204 = vadd.xlane.f32.xlu1 %v201_v30 }
 0x1a0   :  { %136 = vperm.xlu1 %266, %v130_v31  }
 0x21c   :  { %v205_v33 = vpop.xlane.xlu1 %204 }
 0x21d   :  { %v206_v34 = vrot.slane %v205_v33, 4 }
 0x21f   :  { %v207_v35 = vadd.f32 %v206_v34, %v205_v33 }
 0x220   :  { %v137_v36 = vpop.permute.xlu1 %136 }
 0x221   :  { %v208_v37 = vrot.slane %v207_v35, 2  ;;  %vm143_vm9 = vcmp.eq.s32.totalorder %v137_v36, %v243_v10 }
 0x222   :  { %v167_v38 = vsel %vm143_vm9, 1e+30, %v128_v17  ;;  %vm159_vm10 = vmand %vm143_vm9, %vm157_vm8 }
 0x223   :  { %170 = vmin.xlane.f32.xlu0 %v167_v38  ;;  %v161_v39 = vsel %vm159_vm10, %v128_v17, 1e+30  ;;  %v209_v40 = vadd.f32 %v208_v37, %v207_v35 }
 0x224   :  { %164 = vmin.xlane.f32.xlu1 %v161_v39 }
 0x225   :  { %v210_v41 = vrot.slane %v209_v40, 1 }
 0x227   :  { %v211_v42 = vadd.f32 %v210_v41, %v209_v40 }
 0x229   :  { %255 = vpush %v211_v42 }
 0x25a   :  { %s256_s4 = spop %255 }
 0x25b   :  { %v213_v44 = vstv %s256_s4 }
 0x25c   :  { %v214_v45 = vadd.f32 %v213_v44, %v188_v43 }
 0x25e   :  { %216 = vst.msk [vmem:[#allocation7] sm:$0x1] %vm42_vm7, %v214_v45 }
 0x265   :  { %v219_v46 = vld [vmem:[#allocation7] sm:$0x1] }
 0x266   :  { %v220_v47 = vmul.f32 0.125, %v219_v46 }
 0x268   :  { %222 = vst.msk [vmem:[#allocation7] sm:$0x1] %vm42_vm7, %v220_v47 }
 0x269   :  { %303 = shalt.err (!%p300_p12)
}
 0x26a   :  { %s304_s21 = scalar_lea.hbm %s415_s5, 16 }
 0x26b   :  { %p305_p13 = scmp.ne.s32.totalorder %s415_s5, %s304_s21  ;;  %p308_p0 = scmp.lt.u32.totalorder %s304_s21, %s415_s5 }
 0x26d   :  { %p310_p1 = pnand %p308_p0, %p305_p13 }
 0x26f   :  { %313 = shalt.err (!%p310_p1)
}
 0x270   :  { %232 = dma.vmem_to_hbm [thread:$0]  %s230_s16, 16, %s415_s5, [#allocation6]   ;;  %v180_v48 = vld [vmem:[#allocation3 + $0x8] sm:$0xff]  ;;  %v173_v49 = vld [vmem:[#allocation2 + $0x8] sm:$0xff] }
 0x2b0   :  { %v171_v50 = vpop.xlane.xlu0 %170 }
 0x2b1   :  { %v182_v51 = vmin.f32 %v180_v48, %v171_v50  ;;  %v165_v52 = vpop.xlane.xlu1 %164 }
 0x2b2   :  { %v175_v53 = vmin.f32 %v173_v49, %v165_v52 }
 0x2b3   :  { %184 = vst.msk [vmem:[#allocation3 + $0x8] sm:$0xff] %vm47_vm2, %v182_v51 }
 0x2b4   :  { %178 = vst.msk [vmem:[#allocation2 + $0x8] sm:$0xff] %vm47_vm2, %v175_v53 }
 0x2b5   :  { %316 = dma.done.wait [#allocation6], 16  }
 0x2b6   :  { %317 = vsyncadd [#allocation6], 4294967280 }
 0x2b7   :  { %236 = vsyncpa [#allocation5], 1 }
 0x2b8   :  { %237 = vsyncpa [#allocation6], 1 }

// kernel: tpu_custom_call.1
= control target key start
LH: loop header
LB: loop body
LE: loop exit
PB: predicated region body
PF: predicated region fallthrough
CT: control target
= control target key end

     0   :  { %10 = vsyncpa [#allocation5], 0  ;;  %s410_s0 = inlined_call_operand.hbm [shape: bf16[16,32], index: 0, kind: input, shape index: {}]   ;;  %s411_s1 = inlined_call_operand.vmem [shape: bf16[32,128], index: 1, kind: input, shape index: {}]   ;;  %s412_s2 = inlined_call_operand.vmem [shape: f32[1,128], index: 2, kind: input, shape index: {}]   ;;  %s413_s3 = inlined_call_operand.vmem [shape: s32[1,128], index: 3, kind: input, shape index: {}]   ;;  %s414_s4 = inlined_call_operand.vmem [shape: s32[16,1], index: 4, kind: input, shape index: {}]   ;;  %s415_s5 = inlined_call_operand.hbm [shape: f32[1,1], index: 5, kind: output, shape index: {}]  }
   0x1   :  { %11 = vsyncpa [#allocation6], 0  ;;  %s318_s18 = smov [#allocation4]   ;;  %s270_s22 = scalar_lea.hbm %s410_s0, 128 }
   0x2   :  { %s17_s19 = sshll.u32 %s318_s18, 4  ;;  %p271_p0 = scmp.ne.s32.totalorder %s410_s0, %s270_s22  ;;  %s18_s19 = int_to_ptr.vmem [resolvable:$true] %s17_s19 }
   0x3   :  { %p274_p1 = scmp.lt.u32.totalorder %s270_s22, %s410_s0 }
   0x5   :  { %p276_p2 = pnand %p274_p1, %p271_p0 }
   0x7   :  { %279 = shalt.err (!%p276_p2)
}
   0x8   :  { %s280_s27 = scalar_lea.vmem %s18_s19, 128  ;;  %p285_p4 = scmp.lt.s32.totalorder %s18_s19, %s18_s19 }
   0x9   :  { %p281_p3 = scmp.ne.s32.totalorder %s18_s19, %s280_s27  ;;  %p286_p5 = scmp.lt.s32.totalorder %s280_s27, %s280_s27 }
   0xb   :  { %p287_p6 = por %p286_p5, %p285_p4 }
   0xd   :  { %p288_p7 = pnand %p287_p6, %p281_p3 }
   0xf   :  { %291 = shalt.err (!%p288_p7)
}
  0x10   :  { %s319_s28 = smov 64   ;;  %s320_s29 = smov 4  }
  0x11   :  { %23 = dma.hbm_to_vmem [thread:$0]  %s410_s0, 128, %s18_s19, [#allocation5], %s319_s28, %s319_s28, %s320_s29  }
  0x12   :  { %314 = dma.done.wait [#allocation5], 128  }
  0x13   :  { %315 = vsyncadd [#allocation5], 4294967168  ;;  %v321_v0 = vmov 0.0   ;;  %vm322_vm0 = vmmov 0   ;;  %v323_v1 = vmov 0   ;;  %v267_v2 = vld [vmem:[%s411_s1] sm:$0xff]   ;;  %v145_v7 = vlaneseq }
  0x14   :  { %247 = vmatprep.subr.bf16.mxu0 %v321_v0  ;;  %251 = vmatprep.mubr.msk.bf16.mxu0 %vm322_vm0, %v321_v0  ;;  %v268_v3 = vld [vmem:[%s411_s1 + $0x8] sm:$0xff]   ;;  %v129_v4 = vld [vmem:[%s414_s4] sm:$0xff]  ;;  %vm75_vm1 = vcmask 261120   ;;  %vm47_vm2 = vcmask 7168   ;;  %v324_v6 = vmov 1e+30  }
  0x15   :  { %265 = vset.pattern.permute.xlu0 %v323_v1  ;;  %266 = vset.pattern.permute.xlu1 %v323_v1  ;;  %v269_v5 = vld [vmem:[#allocation4] sm:$0xff]   ;;  %50 = vst.msk [vmem:[#allocation3] sm:$0xff] %vm47_vm2, %v324_v6  ;;  %48 = vst.msk [vmem:[#allocation2] sm:$0xff] %vm47_vm2, %v324_v6  ;;  %v146_v8 = vshrl.u32 %v145_v7, 7  ;;  %v153_v9 = vand.u32 127, %v145_v7  ;;  %v130_v31 = vld [vmem:[%s414_s4 + $0x8] sm:$0xff] }
  0x16   :  { %248 = vmatpush3.bf16.msra.mxu0 %v267_v2  ;;  %133 = vperm.xlu0 %265, %v129_v4   ;;  %49 = vst.msk [vmem:[#allocation2 + $0x8] sm:$0xff] %vm47_vm2, %v324_v6  ;;  %51 = vst.msk [vmem:[#allocation3 + $0x8] sm:$0xff] %vm47_vm2, %v324_v6  ;;  %v243_v10 = vld [vmem:[%s413_s3] ss:$0 sm:$0xff]  ;;  %vm42_vm7 = vcmask 0   ;;  %s325_s15 = smov [#allocation7]  }
  0x17   :  { %249 = vmatprep.subr.bf16.mxu0 %v321_v0  ;;  %vm156_vm4 = vcmp.ne.s32.totalorder %v146_v8, %v153_v9  ;;  %v242_v12 = vld [vmem:[%s412_s2] ss:$0 sm:$0xff]  ;;  %43 = vst.msk [vmem:[#allocation7] sm:$0x1] %vm42_vm7, %v321_v0  ;;  %v147_v32 = vadd.s32 8, %v146_v8  ;;  %s229_s16 = sshll.u32 %s325_s15, 4  ;;  %s230_s16 = int_to_ptr.vmem [resolvable:$true] %s229_s16 }
  0x18   :  { %s292_s17 = scalar_lea.vmem %s230_s16, 16  ;;  %s296_s18 = scalar_lea.vmem %s230_s16, 32 }
  0x19   :  { %vm157_vm8 = vcmp.ne.s32.totalorder %v147_v32, %v153_v9  ;;  %p293_p8 = scmp.ne.s32.totalorder %s230_s16, %s292_s17  ;;  %p297_p9 = scmp.lt.s32.totalorder %s230_s16, %s230_s16 }
  0x1a   :  { %250 = vmatpush3.bf16.msra.mxu0 %v268_v3  ;;  %p298_p10 = scmp.lt.s32.totalorder %s296_s18, %s292_s17 }
  0x1c   :  { %v179_v21 = vld [vmem:[#allocation3] sm:$0xff]  ;;  %v172_v22 = vld [vmem:[#allocation2] sm:$0xff]  ;;  %p299_p11 = por %p298_p10, %p297_p9 }
  0x1d   :  { %252 = vmatmul.mubr.msk.bf16.vlgmr.msra.gmra.mrb[0].mxu0 %vm75_vm1, %v269_v5 }
  0x1e   :  { %v188_v43 = vld [vmem:[#allocation7] sm:$0x1]  ;;  %p300_p12 = pnand %p299_p11, %p293_p8 }
  0x95   :  { %v134_v11 = vpop.permute.xlu0 %133 }
  0x96   :  { %vm142_vm3 = vcmp.eq.s32.totalorder %v134_v11, %v243_v10 }
  0x97   :  { %vm158_vm5 = vmand %vm142_vm3, %vm156_vm4 }
  0xf0   :  { %v113_v13 = vpop.f32.mrb[0].mxu0 }
  0xf1   :  { %v127_v14 = vsub.f32 %v242_v12, %v113_v13  ;;  %v253_v15 = vpop.f32.mrb[1].mxu0 }
  0xf2   :  { %v116_v16 = vpop.f32.mrb[2].mxu0 }
  0xf3   :  { %v128_v17 = vsub.f32 %v242_v12, %v116_v16  ;;  %v254_v18 = vpop.f32.mrb[3].mxu0  ;;  %v166_v19 = vsel %vm142_vm3, 1e+30, %v127_v14  ;;  %v160_v20 = vsel %vm158_vm5, %v127_v14, 1e+30 }
  0xf4   :  { %168 = vmin.xlane.f32.xlu1 %v166_v19  ;;  %162 = vmin.xlane.f32.xlu0 %v160_v20 }
 0x181   :  { %v169_v23 = vpop.xlane.xlu1 %168  ;;  %v163_v24 = vpop.xlane.xlu0 %162 }
 0x182   :  { %v181_v25 = vmin.f32 %v179_v21, %v169_v23  ;;  %v174_v26 = vmin.f32 %v172_v22, %v163_v24 }
 0x184   :  { %183 = vst.msk [vmem:[#allocation3] sm:$0xff] %vm47_vm2, %v181_v25  ;;  %177 = vst.msk [vmem:[#allocation2] sm:$0xff] %vm47_vm2, %v174_v26 }
 0x18b   :  { %v191_v27 = vld [vmem:[#allocation2] sm:$0xff]  ;;  %v193_v28 = vld [vmem:[#allocation3] sm:$0xff] }
 0x18c   :  { %vm195_vm6 = vcmp.lt.f32.partialorder %v191_v27, %v193_v28 }
 0x18d   :  { %v199_v29 = vsel %vm195_vm6, 1.0, %v321_v0 }
 0x18e   :  { %v201_v30 = vsel %vm47_vm2, %v199_v29, 0.0 }
 0x18f   :  { %204 = vadd.xlane.f32.xlu1 %v201_v30 }
 0x1a0   :  { %136 = vperm.xlu1 %266, %v130_v31  }
 0x21c   :  { %v205_v33 = vpop.xlane.xlu1 %204 }
 0x21d   :  { %v206_v34 = vrot.slane %v205_v33, 4 }
 0x21f   :  { %v207_v35 = vadd.f32 %v206_v34, %v205_v33 }
 0x220   :  { %v137_v36 = vpop.permute.xlu1 %136 }
 0x221   :  { %v208_v37 = vrot.slane %v207_v35, 2  ;;  %vm143_vm9 = vcmp.eq.s32.totalorder %v137_v36, %v243_v10 }
 0x222   :  { %v167_v38 = vsel %vm143_vm9, 1e+30, %v128_v17  ;;  %vm159_vm10 = vmand %vm143_vm9, %vm157_vm8 }
 0x223   :  { %170 = vmin.xlane.f32.xlu0 %v167_v38  ;;  %v161_v39 = vsel %vm159_vm10, %v128_v17, 1e+30  ;;  %v209_v40 = vadd.f32 %v208_v37, %v207_v35 }
 0x224   :  { %164 = vmin.xlane.f32.xlu1 %v161_v39 }
 0x225   :  { %v210_v41 = vrot.slane %v209_v40, 1 }
 0x227   :  { %v211_v42 = vadd.f32 %v210_v41, %v209_v40 }
 0x229   :  { %255 = vpush %v211_v42 }
 0x25a   :  { %s256_s4 = spop %255 }
 0x25b   :  { %v213_v44 = vstv %s256_s4 }
 0x25c   :  { %v214_v45 = vadd.f32 %v213_v44, %v188_v43 }
 0x25e   :  { %216 = vst.msk [vmem:[#allocation7] sm:$0x1] %vm42_vm7, %v214_v45 }
 0x265   :  { %v219_v46 = vld [vmem:[#allocation7] sm:$0x1] }
 0x266   :  { %v220_v47 = vmul.f32 0.125, %v219_v46 }
 0x268   :  { %222 = vst.msk [vmem:[#allocation7] sm:$0x1] %vm42_vm7, %v220_v47 }
 0x269   :  { %303 = shalt.err (!%p300_p12)
}
 0x26a   :  { %s304_s21 = scalar_lea.hbm %s415_s5, 16 }
 0x26b   :  { %p305_p13 = scmp.ne.s32.totalorder %s415_s5, %s304_s21  ;;  %p308_p0 = scmp.lt.u32.totalorder %s304_s21, %s415_s5 }
 0x26d   :  { %p310_p1 = pnand %p308_p0, %p305_p13 }
 0x26f   :  { %313 = shalt.err (!%p310_p1)
}
 0x270   :  { %232 = dma.vmem_to_hbm [thread:$0]  %s230_s16, 16, %s415_s5, [#allocation6]   ;;  %v180_v48 = vld [vmem:[#allocation3 + $0x8] sm:$0xff]  ;;  %v173_v49 = vld [vmem:[#allocation2 + $0x8] sm:$0xff] }
 0x2b0   :  { %v171_v50 = vpop.xlane.xlu0 %170 }
 0x2b1   :  { %v182_v51 = vmin.f32 %v180_v48, %v171_v50  ;;  %v165_v52 = vpop.xlane.xlu1 %164 }
 0x2b2   :  { %v175_v53 = vmin.f32 %v173_v49, %v165_v52 }
 0x2b3   :  { %184 = vst.msk [vmem:[#allocation3 + $0x8] sm:$0xff] %vm47_vm2, %v182_v51 }
 0x2b4   :  { %178 = vst.msk [vmem:[#allocation2 + $0x8] sm:$0xff] %vm47_vm2, %v175_v53 }
 0x2b5   :  { %316 = dma.done.wait [#allocation6], 16  }
 0x2b6   :  { %317 = vsyncadd [#allocation6], 4294967280 }
 0x2b7   :  { %236 = vsyncpa [#allocation5], 1 }
 0x2b8   :  { %237 = vsyncpa [#allocation6], 1 }

</bundles_post_ra>
